<compile_context>
chip_gen: v7x
topology: tpu7x:2x2x1
jax: 0.10.0
libtpu: 0.0.40
codegen_flags: <defaults>
</compile_context>

<pallas_src>
import jax
import jax.numpy as jnp
from jax.experimental import pallas as pl
from jax.experimental.pallas import tpu as pltpu


def _round_up(n: int, m: int) -> int:
    return ((n + m - 1) // m) * m


def _linear_tanh_kernel(x_ref, w_ref, b_ref, o_ref):
    # x_ref: VMEM (IN, TB)   -- lane-dense batch tile of x^T
    # w_ref: SMEM (OUT, IN)  -- resident weights (PyTorch layout)
    # b_ref: SMEM (OUT,)     -- resident bias
    # o_ref: VMEM (OUT, TB)  -- lane-dense batch tile of out^T
    x = x_ref[...]                       # (IN, TB) f32
    in_features = x_ref.shape[0]         # static (4)
    out_features = o_ref.shape[0]        # static (2)

    rows = []
    for c in range(out_features):        # static unroll: 2 output rows
        # VPU contraction: scalar-weight FMAs (4 vmul + 3 vadd per row).
        acc = x[0:1, :] * w_ref[c, 0]
        for k in range(1, in_features):  # static unroll
            acc = acc + x[k : k + 1, :] * w_ref[c, k]
        rows.append(jnp.tanh(acc + b_ref[c]))   # bias add + EUP tanh, (1, TB)

    o_ref[...] = jnp.concatenate(rows, axis=0)  # single full-block store (OUT, TB)


def net_forward(x, weight, bias, *, tb: int = 2048):
    """tanh(x @ weight.T + bias) as a batch-tiled, lane-dense Pallas kernel.

    x:      [B, 4]  float32
    weight: [2, 4]  float32 (PyTorch Linear layout: [out_features, in_features])
    bias:   [2]     float32
    returns [B, 2]  float32
    """
    B, IN = x.shape
    OUT, IN_w = weight.shape
    assert IN == IN_w and bias.shape == (OUT,)

    # Tile size: multiple of 128 lanes, no larger than needed for small B.
    tb = _round_up(tb, 128)
    TB = min(tb, _round_up(B, 128))
    Bp = _round_up(B, TB)
    grid = (Bp // TB,)

    # Lane-dense transposed layout with zero-padding of the batch axis.
    x_t = jnp.pad(x.T, ((0, 0), (0, Bp - B)))          # [IN, Bp]

    out_t = pl.pallas_call(
        _linear_tanh_kernel,
        out_shape=jax.ShapeDtypeStruct((OUT, Bp), x.dtype),
        grid_spec=pl.GridSpec(
            grid=grid,
            in_specs=[
                # x^T batch tile: pipelined / double-buffered across the grid.
                pl.BlockSpec((IN, TB), lambda i: (0, i)),
                # Tiny weight & bias stay resident in SMEM (scalar reads).
                pl.BlockSpec(memory_space=pltpu.MemorySpace.SMEM),
                pl.BlockSpec(memory_space=pltpu.MemorySpace.SMEM),
            ],
            out_specs=pl.BlockSpec((OUT, TB), lambda i: (0, i)),
        ),
        compiler_params=pltpu.CompilerParams(
            # Independent batch tiles -> shard across TensorCores (v7x megacore).
            dimension_semantics=("parallel",),
        ),
    )(x_t, weight, bias)

    return out_t[:, :B].T                                # [B, OUT]


if __name__ == "__main__":
    key = jax.random.PRNGKey(0)
    kx, kw, kb, kx2 = jax.random.split(key, 4)

    B, IN, OUT = 2, 4, 2

    # Deterministic parameter init (mirrors nn.Linear uniform(-1/sqrt(in), 1/sqrt(in)))
    bound = 1.0 / (IN ** 0.5)
    weight = jax.random.uniform(kw, (OUT, IN), jnp.float32, -bound, bound)
    bias = jax.random.uniform(kb, (OUT,), jnp.float32, -bound, bound)

    # Small shape matching the module's forward (x: [B, 4]).
    x = jax.random.normal(kx, (B, IN), jnp.float32)
    out = net_forward(x, weight, bias)
    jax.block_until_ready(out)

    ref = jnp.tanh(x @ weight.T + bias)
    assert out.shape == (B, OUT)
    assert jnp.allclose(out, ref, atol=1e-5, rtol=1e-5)

    # Exercise the multi-tile grid path (3 batch tiles of 128) + padding slice.
    B2 = 384 - 5
    x2 = jax.random.normal(kx2, (B2, IN), jnp.float32)
    out2 = net_forward(x2, weight, bias, tb=128)
    jax.block_until_ready(out2)
    ref2 = jnp.tanh(x2 @ weight.T + bias)
    assert out2.shape == (B2, OUT)
    assert jnp.allclose(out2, ref2, atol=1e-5, rtol=1e-5)

    print("KERNEL_OK")
</pallas_src>

<mosaic_0001>
module attributes {stable_mosaic.version = 11 : i64} {
  func.func @_linear_tanh_kernel(%arg0: i32, %arg1: memref<4x128xf32, #tpu.memory_space<vmem>>, %arg2: memref<2x4xf32, #tpu.memory_space<smem>>, %arg3: memref<2xf32, #tpu.memory_space<smem>>, %arg4: memref<2x128xf32, #tpu.memory_space<vmem>>) attributes {dimension_semantics = [#tpu.dimension_semantics<parallel>], iteration_bounds = array<i64: 1>, scalar_prefetch = 0 : i64, scratch_operands = 0 : i64, tpu.core_type = #tpu.core_type<tc>, window_params = [{transform_indices = @transform_0, window_bounds = array<i64: 4, 128>}, {transform_indices = @transform_1, window_bounds = array<i64: 2, 4>}, {transform_indices = @transform_2, window_bounds = array<i64: 2>}, {transform_indices = @transform_3, window_bounds = array<i64: 2, 128>}]} {
    %c0 = arith.constant 0 : index
    %c0_0 = arith.constant 0 : index
    %0 = vector.load %arg1[%c0, %c0_0] : memref<4x128xf32, #tpu.memory_space<vmem>>, vector<4x128xf32>
    %1 = vector.extract_strided_slice %0 {offsets = [0, 0], sizes = [1, 128], strides = [1, 1]} : vector<4x128xf32> to vector<1x128xf32>
    %c0_1 = arith.constant 0 : index
    %c0_2 = arith.constant 0 : index
    %2 = memref.load %arg2[%c0_1, %c0_2] : memref<2x4xf32, #tpu.memory_space<smem>>
    %3 = vector.broadcast %2 : f32 to vector<1x128xf32>
    %4 = arith.mulf %1, %3 : vector<1x128xf32>
    %5 = vector.extract_strided_slice %0 {offsets = [1, 0], sizes = [1, 128], strides = [1, 1]} : vector<4x128xf32> to vector<1x128xf32>
    %c0_3 = arith.constant 0 : index
    %c1 = arith.constant 1 : index
    %6 = memref.load %arg2[%c0_3, %c1] : memref<2x4xf32, #tpu.memory_space<smem>>
    %7 = vector.broadcast %6 : f32 to vector<1x128xf32>
    %8 = arith.mulf %5, %7 : vector<1x128xf32>
    %9 = arith.addf %4, %8 : vector<1x128xf32>
    %10 = vector.extract_strided_slice %0 {offsets = [2, 0], sizes = [1, 128], strides = [1, 1]} : vector<4x128xf32> to vector<1x128xf32>
    %c0_4 = arith.constant 0 : index
    %c2 = arith.constant 2 : index
    %11 = memref.load %arg2[%c0_4, %c2] : memref<2x4xf32, #tpu.memory_space<smem>>
    %12 = vector.broadcast %11 : f32 to vector<1x128xf32>
    %13 = arith.mulf %10, %12 : vector<1x128xf32>
    %14 = arith.addf %9, %13 : vector<1x128xf32>
    %15 = vector.extract_strided_slice %0 {offsets = [3, 0], sizes = [1, 128], strides = [1, 1]} : vector<4x128xf32> to vector<1x128xf32>
    %c0_5 = arith.constant 0 : index
    %c3 = arith.constant 3 : index
    %16 = memref.load %arg2[%c0_5, %c3] : memref<2x4xf32, #tpu.memory_space<smem>>
    %17 = vector.broadcast %16 : f32 to vector<1x128xf32>
    %18 = arith.mulf %15, %17 : vector<1x128xf32>
    %19 = arith.addf %14, %18 : vector<1x128xf32>
    %c0_6 = arith.constant 0 : index
    %20 = memref.load %arg3[%c0_6] : memref<2xf32, #tpu.memory_space<smem>>
    %21 = vector.broadcast %20 : f32 to vector<1x128xf32>
    %22 = arith.addf %19, %21 : vector<1x128xf32>
    %23 = math.tanh %22 : vector<1x128xf32>
    %24 = vector.extract_strided_slice %0 {offsets = [0, 0], sizes = [1, 128], strides = [1, 1]} : vector<4x128xf32> to vector<1x128xf32>
    %c1_7 = arith.constant 1 : index
    %c0_8 = arith.constant 0 : index
    %25 = memref.load %arg2[%c1_7, %c0_8] : memref<2x4xf32, #tpu.memory_space<smem>>
    %26 = vector.broadcast %25 : f32 to vector<1x128xf32>
    %27 = arith.mulf %24, %26 : vector<1x128xf32>
    %28 = vector.extract_strided_slice %0 {offsets = [1, 0], sizes = [1, 128], strides = [1, 1]} : vector<4x128xf32> to vector<1x128xf32>
    %c1_9 = arith.constant 1 : index
    %c1_10 = arith.constant 1 : index
    %29 = memref.load %arg2[%c1_9, %c1_10] : memref<2x4xf32, #tpu.memory_space<smem>>
    %30 = vector.broadcast %29 : f32 to vector<1x128xf32>
    %31 = arith.mulf %28, %30 : vector<1x128xf32>
    %32 = arith.addf %27, %31 : vector<1x128xf32>
    %33 = vector.extract_strided_slice %0 {offsets = [2, 0], sizes = [1, 128], strides = [1, 1]} : vector<4x128xf32> to vector<1x128xf32>
    %c1_11 = arith.constant 1 : index
    %c2_12 = arith.constant 2 : index
    %34 = memref.load %arg2[%c1_11, %c2_12] : memref<2x4xf32, #tpu.memory_space<smem>>
    %35 = vector.broadcast %34 : f32 to vector<1x128xf32>
    %36 = arith.mulf %33, %35 : vector<1x128xf32>
    %37 = arith.addf %32, %36 : vector<1x128xf32>
    %38 = vector.extract_strided_slice %0 {offsets = [3, 0], sizes = [1, 128], strides = [1, 1]} : vector<4x128xf32> to vector<1x128xf32>
    %c1_13 = arith.constant 1 : index
    %c3_14 = arith.constant 3 : index
    %39 = memref.load %arg2[%c1_13, %c3_14] : memref<2x4xf32, #tpu.memory_space<smem>>
    %40 = vector.broadcast %39 : f32 to vector<1x128xf32>
    %41 = arith.mulf %38, %40 : vector<1x128xf32>
    %42 = arith.addf %37, %41 : vector<1x128xf32>
    %c1_15 = arith.constant 1 : index
    %43 = memref.load %arg3[%c1_15] : memref<2xf32, #tpu.memory_space<smem>>
    %44 = vector.broadcast %43 : f32 to vector<1x128xf32>
    %45 = arith.addf %42, %44 : vector<1x128xf32>
    %46 = math.tanh %45 : vector<1x128xf32>
    %47 = tpu.concatenate %23, %46 in 0 : vector<1x128xf32>, vector<1x128xf32> -> vector<2x128xf32>
    %c0_16 = arith.constant 0 : index
    %c0_17 = arith.constant 0 : index
    %48 = vector.load %arg4[%c0_16, %c0_17] : memref<2x128xf32, #tpu.memory_space<vmem>>, vector<2x128xf32>
    tpu.vector_store %arg4[%c0_16, %c0_17], %47 {strides = array<i32>} : memref<2x128xf32, #tpu.memory_space<vmem>>, vector<2x128xf32>,
    return
  }
  func.func @transform_0(%arg0: i32) -> (i32, i32) {
    %c0_i32 = arith.constant 0 : i32
    %c0_i32_0 = arith.constant 0 : i32
    return %c0_i32, %arg0 : i32, i32
  }
  func.func @transform_1(%arg0: i32) -> (i32, i32) {
    %c0_i32 = arith.constant 0 : i32
    %c0_i32_0 = arith.constant 0 : i32
    %c0_i32_1 = arith.constant 0 : i32
    return %c0_i32, %c0_i32_0 : i32, i32
  }
  func.func @transform_2(%arg0: i32) -> i32 {
    %c0_i32 = arith.constant 0 : i32
    %c0_i32_0 = arith.constant 0 : i32
    return %c0_i32 : i32
  }
  func.func @transform_3(%arg0: i32) -> (i32, i32) {
    %c0_i32 = arith.constant 0 : i32
    %c0_i32_0 = arith.constant 0 : i32
    return %c0_i32, %arg0 : i32, i32
  }
}

</mosaic_0001>

<bundles_post_ra>
// kernel: tpu_custom_call.1
= control target key start
LH: loop header
LB: loop body
LE: loop exit
PB: predicated region body
PF: predicated region fallthrough
CT: control target
= control target key end

     0   :  { %8 = vsyncpa [#allocation3], 0  ;;  %s278_s0 = inlined_call_operand.hbm [shape: f32[4,128], index: 0, kind: input, shape index: {}]   ;;  %s279_s1 = inlined_call_operand.vmem [shape: f32[2,4], index: 1, kind: input, shape index: {}]   ;;  %s280_s2 = inlined_call_operand.vmem [shape: f32[2], index: 2, kind: input, shape index: {}]   ;;  %s281_s3 = inlined_call_operand.hbm [shape: f32[2,128], index: 3, kind: output, shape index: {}]  }
   0x1   :  { %9 = vsyncpa [#allocation5], 0 }
   0x2   :  { %10 = vsyncpa [#allocation8], 0 }
   0x3   :  { %11 = vsyncpa [#allocation4], 0  ;;  %s28_s14 = sshll.u32 %s279_s1, 4  ;;  %s224_s15 = smov [#allocation2]   ;;  %s29_s14 = int_to_ptr.vmem [resolvable:$true] %s28_s14 }
   0x4   :  { %s18_s16 = sshll.u32 %s224_s15, 4  ;;  %s148_s19 = scalar_lea.hbm %s278_s0, 64  ;;  %s19_s16 = int_to_ptr.vmem [resolvable:$true] %s18_s16 }
   0x5   :  { %p149_p0 = scmp.ne.s32.totalorder %s278_s0, %s148_s19  ;;  %p152_p1 = scmp.lt.u32.totalorder %s148_s19, %s278_s0 }
   0x7   :  { %p154_p2 = pnand %p152_p1, %p149_p0 }
   0x9   :  { %157 = shalt.err (!%p154_p2)
}
   0xa   :  { %s158_s24 = scalar_lea.vmem %s19_s16, 64  ;;  %p163_p4 = scmp.lt.s32.totalorder %s19_s16, %s19_s16 }
   0xb   :  { %p159_p3 = scmp.ne.s32.totalorder %s19_s16, %s158_s24  ;;  %p164_p5 = scmp.lt.s32.totalorder %s158_s24, %s158_s24 }
   0xd   :  { %p165_p6 = por %p164_p5, %p163_p4 }
   0xf   :  { %p166_p7 = pnand %p165_p6, %p159_p3 }
  0x11   :  { %169 = shalt.err (!%p166_p7)
}
  0x12   :  { %21 = dma.hbm_to_vmem [thread:$0]  %s278_s0, 64, %s19_s16, [#allocation3]  }
  0x13   :  { %s170_s26 = scalar_lea.vmem %s29_s14, 32  ;;  %p175_p9 = scmp.lt.s32.totalorder %s29_s14, %s29_s14 }
  0x14   :  { %p171_p8 = scmp.ne.s32.totalorder %s29_s14, %s170_s26  ;;  %p176_p10 = scmp.lt.s32.totalorder %s170_s26, %s170_s26 }
  0x16   :  { %p177_p11 = por %p176_p10, %p175_p9 }
  0x18   :  { %p178_p12 = pnand %p177_p11, %p171_p8 }
  0x1a   :  { %181 = shalt.err (!%p178_p12)
}
  0x1b   :  { %s225_s27 = smov [#allocation6]   ;;  %s38_s30 = sshll.u32 %s280_s2, 4  ;;  %s39_s30 = int_to_ptr.vmem [resolvable:$true] %s38_s30 }
  0x1c   :  { %31 = dma.vmem_to_smem %s29_s14, 32, %s225_s27, [#allocation5]  }
  0x1d   :  { %s182_s4 = scalar_lea.vmem %s39_s30, 16  ;;  %p187_p0 = scmp.lt.s32.totalorder %s39_s30, %s39_s30 }
  0x1e   :  { %p183_p13 = scmp.ne.s32.totalorder %s39_s30, %s182_s4  ;;  %p188_p1 = scmp.lt.s32.totalorder %s182_s4, %s182_s4 }
  0x20   :  { %p189_p2 = por %p188_p1, %p187_p0 }
  0x22   :  { %p190_p3 = pnand %p189_p2, %p183_p13 }
  0x24   :  { %193 = shalt.err (!%p190_p3)
}
  0x25   :  { %s226_s0 = smov [#allocation7]  }
  0x26   :  { %41 = dma.vmem_to_smem %s39_s30, 16, %s226_s0, [#allocation8]  }
  0x27   :  { %216 = dma.done.wait [#allocation3], 64  }
  0x28   :  { %217 = vsyncadd [#allocation3], 4294967232 }
  0x29   :  { %218 = dma.done.wait [#allocation5], 32  }
  0x2a   :  { %219 = vsyncadd [#allocation5], 4294967264 }
  0x2b   :  { %220 = dma.done.wait [#allocation8], 16  }
  0x2c   :  { %221 = vsyncadd [#allocation8], 4294967280 }
  0x2d   :  { %51 = sfence }
  0x2e   :  { %s53_s5 = sld [smem:[#allocation6]]  ;;  %s132_s6 = sld [smem:[#allocation6 + $0x1]]  ;;  %v52_v0 = vld [vmem:[#allocation2] sm:$0xf]  ;;  %vm112_vm0 = vcmask 1040384  }
  0x2f   :  { %s133_s2 = sld [smem:[#allocation6 + $0x2]]  ;;  %s134_s7 = sld [smem:[#allocation6 + $0x3]] }
  0x30   :  { %s135_s8 = sld [smem:[#allocation6 + $0x80]]  ;;  %s136_s9 = sld [smem:[#allocation6 + $0x81]] }
  0x31   :  { %s137_s10 = sld [smem:[#allocation6 + $0x82]]  ;;  %s138_s11 = sld [smem:[#allocation6 + $0x83]] }
  0x32   :  { %s77_s12 = sld [smem:[#allocation7]]  ;;  %s139_s13 = sld [smem:[#allocation7 + $0x1]] }
  0x33   :  { %s227_s14 = smov [#allocation9]  }
  0x34   :  { %v54_v1 = vstv %s53_s5  ;;  %v57_v2 = vstv %s132_s6  ;;  %s121_s15 = sshll.u32 %s227_s14, 4  ;;  %s122_s15 = int_to_ptr.vmem [resolvable:$true] %s121_s15 }
  0x35   :  { %v55_v3 = vmul.f32 %v54_v1, %v52_v0  ;;  %v58_v4 = vmul.f32 %v57_v2, %v52_v0  ;;  %v64_v5 = vstv %s133_s2  ;;  %v71_v6 = vstv %s134_s7  ;;  %s194_s16 = scalar_lea.vmem %s122_s15, 32  ;;  %p199_p5 = scmp.lt.s32.totalorder %s122_s15, %s122_s15 }
  0x36   :  { %v65_v7 = vmul.f32 %v64_v5, %v52_v0  ;;  %v72_v8 = vmul.f32 %v71_v6, %v52_v0  ;;  %v82_v9 = vstv %s135_s8  ;;  %v85_v11 = vstv %s136_s9  ;;  %p195_p4 = scmp.ne.s32.totalorder %s122_s15, %s194_s16  ;;  %p200_p6 = scmp.lt.s32.totalorder %s194_s16, %s194_s16 }
  0x37   :  { %v60_v10 = vrot.slane %v58_v4, 1  ;;  %v92_v12 = vstv %s137_s10  ;;  %v83_v14 = vmul.f32 %v82_v9, %v52_v0  ;;  %v86_v15 = vmul.f32 %v85_v11, %v52_v0 }
  0x38   :  { %v67_v13 = vrot.slane %v65_v7, 2  ;;  %v93_v16 = vmul.f32 %v92_v12, %v52_v0  ;;  %v74_v18 = vrot.slane %v72_v8, 3  ;;  %v99_v19 = vstv %s138_s11  ;;  %p201_p7 = por %p200_p6, %p199_p5 }
  0x39   :  { %v62_v17 = vadd.f32 %v60_v10, %v55_v3  ;;  %v88_v20 = vrot.slane %v86_v15, 1  ;;  %v100_v22 = vmul.f32 %v99_v19, %v52_v0  ;;  %v78_v24 = vstv %s77_s12 }
  0x3a   :  { %v95_v21 = vrot.slane %v93_v16, 2  ;;  %v106_v30 = vstv %s139_s13  ;;  %p202_p8 = pnand %p201_p7, %p195_p4 }
  0x3b   :  { %v69_v23 = vadd.f32 %v67_v13, %v62_v17  ;;  %v90_v25 = vadd.f32 %v88_v20, %v83_v14  ;;  %v102_v26 = vrot.slane %v100_v22, 3 }
  0x3d   :  { %v76_v27 = vadd.f32 %v74_v18, %v69_v23  ;;  %v97_v28 = vadd.f32 %v95_v21, %v90_v25 }
  0x3f   :  { %v79_v29 = vadd.f32 %v78_v24, %v76_v27  ;;  %v104_v31 = vadd.f32 %v102_v26, %v97_v28 }
  0x41   :  { %v107_v32 = vadd.f32 %v106_v30, %v104_v31  ;;  %144 = vtanh.f32 %v79_v29 }
  0x43   :  { %146 = vtanh.f32 %v107_v32 }
  0x4b   :  { %v145_v33 = vpop.eup %144 }
  0x4d   :  { %v147_v34 = vpop.eup %146 }
  0x4e   :  { %v110_v35 = vrot.slane %v147_v34, 7 }
  0x50   :  { %v113_v36 = vsel %vm112_vm0, %v145_v33, %v110_v35 }
  0x51   :  { %114 = vst [vmem:[#allocation9] sm:$0x3] %v113_v36 }
  0x52   :  { %205 = shalt.err (!%p202_p8)
}
  0x53   :  { %s206_s19 = scalar_lea.hbm %s281_s3, 32 }
  0x54   :  { %p207_p9 = scmp.ne.s32.totalorder %s281_s3, %s206_s19  ;;  %p210_p10 = scmp.lt.u32.totalorder %s206_s19, %s281_s3 }
  0x56   :  { %p212_p11 = pnand %p210_p10, %p207_p9 }
  0x58   :  { %215 = shalt.err (!%p212_p11)
}
  0x59   :  { %124 = dma.vmem_to_hbm [thread:$0]  %s122_s15, 32, %s281_s3, [#allocation4]  }
  0x5a   :  { %222 = dma.done.wait [#allocation4], 32  }
  0x5b   :  { %223 = vsyncadd [#allocation4], 4294967264 }
  0x5c   :  { %128 = vsyncpa [#allocation3], 1 }
  0x5d   :  { %129 = vsyncpa [#allocation4], 1 }
  0x5e   :  { %130 = vsyncpa [#allocation5], 1 }
  0x5f   :  { %131 = vsyncpa [#allocation8], 1 }

</bundles_post_ra>
